<compile_context>
chip_gen: v7x
topology: tpu7x:2x2x1
jax: 0.10.0
libtpu: 0.0.40
codegen_flags: <defaults>
</compile_context>

<pallas_src>
import functools

import jax
import jax.numpy as jnp
from jax.experimental import pallas as pl
from jax.experimental.pallas import tpu as pltpu

MAX_TILE_N = 8192  # cap on lanes (collocation points) per grid step


def _round_up(n, m):
    return ((n + m - 1) // m) * m


def _default_tile_n(n):
    """1 grid step on single-TC chips (v5e/v6e); 2 'parallel' steps if 2 TCs are visible (v7x)."""
    cores = 1
    try:
        cores = int(getattr(jax.devices()[0], "num_cores", 1) or 1)
    except Exception:
        cores = 1
    cores = max(1, min(cores, 2))
    per_step = -(-n // cores)  # ceil
    return min(_round_up(max(per_step, 128), 128), MAX_TILE_N)


def _mlp_kernel(n_hidden, *refs):
    """Feature-major PINN MLP: activations are (features, tile_n), batch in lanes.

    refs = (x(1, tile_n),
            w0(h0, 1), b0(h0, 1),                              # input layer (fan_in == 1)
            [wT_j(h_{j+1}, h_j), b_j(h_{j+1}, 1)] * n_hidden,  # hidden layers (transposed)
            wl(h_last, 1), bl(1, 1),                           # output layer (fan_out == 1)
            out(1, tile_n))
    """
    x_ref = refs[0]
    out_ref = refs[-1]
    p = refs[1:-1]

    x = x_ref[...]                                       # (1, tile_n), lane-dense
    # Input layer: fan_in == 1 -> sublane broadcast of x across the h0 feature rows (VPU + EUP).
    h = jnp.tanh(p[0][...] * x + p[1][...])              # (h0, tile_n)

    # Hidden layers: small-M MXU matmuls whose lane-dense output dim is the batch.
    idx = 2
    for _ in range(n_hidden):
        wT = p[idx][...]                                 # (h_{j+1}, h_j)
        b = p[idx + 1][...]                              # (h_{j+1}, 1)
        idx += 2
        h = jnp.tanh(
            jnp.dot(wT, h, preferred_element_type=jnp.float32,
                    precision=jax.lax.Precision.HIGHEST)
            + b)                                         # (h_{j+1}, tile_n)

    # Output layer: fan_out == 1 -> VPU multiply + sublane (XLU) reduce, lane-dense store.
    wl = p[idx][...]                                     # (h_last, 1)
    bl = p[idx + 1][...]                                 # (1, 1)
    out_ref[...] = jnp.sum(h * wl, axis=0, keepdims=True) + bl   # (1, tile_n)


def pinn_forward(x, weights, biases, *, tile_n=None):
    """PINN.forward: x (N,) f32 -> (N,) f32.

    weights[i]: (fan_in_i, fan_out_i), biases[i]: (fan_out_i,).
    weights[0] has fan_in 1, weights[-1] has fan_out 1.
    """
    n = x.shape[0]
    n_mats = len(weights)
    assert n_mats >= 2, "need at least input_layer and output_layer"
    n_hidden = n_mats - 2

    if tile_n is None:
        tile_n = _default_tile_n(n)
    tile_n = _round_up(tile_n, 128)
    n_pad = _round_up(max(n, tile_n), tile_n)
    grid_n = n_pad // tile_n

    # Lane-dense (1, n_pad) input row: the batch lives in the lane dimension.
    xr = x.astype(jnp.float32).reshape(1, n)
    if n_pad != n:
        xr = jnp.pad(xr, ((0, 0), (0, n_pad - n)))

    # Feature-major parameters at their TRUE shapes (no 128x128 zero padding).
    args = [xr]
    args.append(weights[0].astype(jnp.float32).reshape(-1, 1))    # (h0, 1)
    args.append(biases[0].astype(jnp.float32).reshape(-1, 1))     # (h0, 1)
    for w, b in zip(weights[1:-1], biases[1:-1]):
        args.append(w.astype(jnp.float32).T)                      # (h_{j+1}, h_j)
        args.append(b.astype(jnp.float32).reshape(-1, 1))         # (h_{j+1}, 1)
    args.append(weights[-1].astype(jnp.float32).reshape(-1, 1))   # (h_last, 1)
    args.append(biases[-1].astype(jnp.float32).reshape(1, 1))     # (1, 1)

    in_specs = [pl.BlockSpec((1, tile_n), lambda i: (0, i))]
    for a in args[1:]:
        # Full-array blocks with a constant index_map: parameters stay resident across the grid.
        in_specs.append(pl.BlockSpec(a.shape, lambda i: (0, 0)))

    cost = pl.CostEstimate(
        flops=int(2 * n_pad * sum(int(w.size) for w in weights)),
        transcendentals=int(n_pad * sum(int(b.size) for b in biases[:-1])),
        bytes_accessed=int(4 * (2 * n_pad + sum(int(a.size) for a in args[1:]))),
    )

    out = pl.pallas_call(
        functools.partial(_mlp_kernel, n_hidden),
        out_shape=jax.ShapeDtypeStruct((1, n_pad), jnp.float32),
        grid_spec=pltpu.PrefetchScalarGridSpec(
            num_scalar_prefetch=0,
            grid=(grid_n,),
            in_specs=in_specs,
            out_specs=pl.BlockSpec((1, tile_n), lambda i: (0, i)),
        ),
        compiler_params=pltpu.CompilerParams(
            dimension_semantics=("parallel",)),
        cost_estimate=cost,
    )(*args)

    return out.reshape(-1)[:n]                                     # forward() returns shape (N,)


def _ref_forward(x, weights, biases):
    h = x.reshape(-1, 1).astype(jnp.float32)
    n_mats = len(weights)
    for li, (w, b) in enumerate(zip(weights, biases)):
        h = jnp.dot(h, w, precision=jax.lax.Precision.HIGHEST) + b
        if li < n_mats - 1:
            h = jnp.tanh(h)
    return h.reshape(-1)


def init_pinn_params(key, hidden_sizes):
    """Deterministic init mimicking nn.Linear (uniform +-1/sqrt(fan_in))."""
    sizes = [1] + list(hidden_sizes) + [1]
    weights, biases = [], []
    for j in range(len(sizes) - 1):
        fan_in, fan_out = sizes[j], sizes[j + 1]
        key, kw, kb = jax.random.split(key, 3)
        bound = 1.0 / jnp.sqrt(jnp.float32(fan_in))
        w = jax.random.uniform(kw, (fan_in, fan_out), jnp.float32, -bound, bound)
        b = jax.random.uniform(kb, (fan_out,), jnp.float32, -bound, bound)
        weights.append(w)
        biases.append(b)
    return weights, biases


if __name__ == "__main__":
    key = jax.random.PRNGKey(0)
    hidden_sizes = [32, 32]                  # PINN([32, 32])
    k_params, k_x = jax.random.split(key)
    weights, biases = init_pinn_params(k_params, hidden_sizes)

    # N = 512 collocation points (small demo; realistic batches just widen the lane tiles).
    N = 512
    x = jax.random.uniform(k_x, (N,), jnp.float32, 0.0, 1.0)

    y = jax.block_until_ready(pinn_forward(x, weights, biases))
    y_ref = _ref_forward(x, weights, biases)
    assert y.shape == (N,)
    assert jnp.allclose(y, y_ref, atol=1e-5, rtol=1e-5)

    # Non-multiple N exercises the internal pad-and-slice path.
    N2 = 200
    x2 = jax.random.uniform(jax.random.PRNGKey(1), (N2,), jnp.float32, 0.0, 1.0)
    y2 = jax.block_until_ready(pinn_forward(x2, weights, biases))
    y2_ref = _ref_forward(x2, weights, biases)
    assert y2.shape == (N2,)
    assert jnp.allclose(y2, y2_ref, atol=1e-5, rtol=1e-5)

    print("KERNEL_OK")
</pallas_src>

<mosaic_0001>
module attributes {stable_mosaic.version = 11 : i64} {
  func.func @_mlp_kernel(%arg0: i32, %arg1: memref<1x512xf32, #tpu.memory_space<vmem>>, %arg2: memref<32x1xf32, #tpu.memory_space<vmem>>, %arg3: memref<32x1xf32, #tpu.memory_space<vmem>>, %arg4: memref<32x32xf32, #tpu.memory_space<vmem>>, %arg5: memref<32x1xf32, #tpu.memory_space<vmem>>, %arg6: memref<32x1xf32, #tpu.memory_space<vmem>>, %arg7: memref<1x1xf32, #tpu.memory_space<vmem>>, %arg8: memref<1x512xf32, #tpu.memory_space<vmem>>) attributes {dimension_semantics = [#tpu.dimension_semantics<parallel>], iteration_bounds = array<i64: 1>, scalar_prefetch = 0 : i64, scratch_operands = 0 : i64, tpu.core_type = #tpu.core_type<tc>, window_params = [{transform_indices = @transform_0, window_bounds = array<i64: 1, 512>}, {pipeline_mode = #tpu.pipeline_mode<synchronous>, transform_indices = @transform_1, window_bounds = array<i64: 32, 1>}, {pipeline_mode = #tpu.pipeline_mode<synchronous>, transform_indices = @transform_2, window_bounds = array<i64: 32, 1>}, {pipeline_mode = #tpu.pipeline_mode<synchronous>, transform_indices = @transform_3, window_bounds = array<i64: 32, 32>}, {pipeline_mode = #tpu.pipeline_mode<synchronous>, transform_indices = @transform_4, window_bounds = array<i64: 32, 1>}, {pipeline_mode = #tpu.pipeline_mode<synchronous>, transform_indices = @transform_5, window_bounds = array<i64: 32, 1>}, {pipeline_mode = #tpu.pipeline_mode<synchronous>, transform_indices = @transform_6, window_bounds = array<i64: 1, 1>}, {transform_indices = @transform_7, window_bounds = array<i64: 1, 512>}]} {
    %c0 = arith.constant 0 : index
    %c0_0 = arith.constant 0 : index
    %0 = vector.load %arg1[%c0, %c0_0] : memref<1x512xf32, #tpu.memory_space<vmem>>, vector<1x512xf32>
    %c0_1 = arith.constant 0 : index
    %c0_2 = arith.constant 0 : index
    %1 = vector.load %arg2[%c0_1, %c0_2] : memref<32x1xf32, #tpu.memory_space<vmem>>, vector<32x1xf32>
    %2 = vector.broadcast %1 : vector<32x1xf32> to vector<32x512xf32>
    %3 = vector.broadcast %0 : vector<1x512xf32> to vector<32x512xf32>
    %4 = arith.mulf %2, %3 : vector<32x512xf32>
    %c0_3 = arith.constant 0 : index
    %c0_4 = arith.constant 0 : index
    %5 = vector.load %arg3[%c0_3, %c0_4] : memref<32x1xf32, #tpu.memory_space<vmem>>, vector<32x1xf32>
    %6 = vector.broadcast %5 : vector<32x1xf32> to vector<32x512xf32>
    %7 = arith.addf %4, %6 : vector<32x512xf32>
    %8 = math.tanh %7 : vector<32x512xf32>
    %c0_5 = arith.constant 0 : index
    %c0_6 = arith.constant 0 : index
    %9 = vector.load %arg4[%c0_5, %c0_6] : memref<32x32xf32, #tpu.memory_space<vmem>>, vector<32x32xf32>
    %c0_7 = arith.constant 0 : index
    %c0_8 = arith.constant 0 : index
    %10 = vector.load %arg5[%c0_7, %c0_8] : memref<32x1xf32, #tpu.memory_space<vmem>>, vector<32x1xf32>
    %cst = arith.constant dense<0.000000e+00> : vector<32x512xf32>
    %11 = tpu.matmul %9, %8, %cst {dimension_numbers = #tpu.dot_dimension_numbers<[1], [0], [0], [1], [0, 0, 1, 1], [], []>, precision = #tpu.contract_precision<fp32>} : vector<32x32xf32>, vector<32x512xf32>, vector<32x512xf32> -> vector<32x512xf32>
    %12 = vector.broadcast %10 : vector<32x1xf32> to vector<32x512xf32>
    %13 = arith.addf %11, %12 : vector<32x512xf32>
    %14 = math.tanh %13 : vector<32x512xf32>
    %c0_9 = arith.constant 0 : index
    %c0_10 = arith.constant 0 : index
    %15 = vector.load %arg6[%c0_9, %c0_10] : memref<32x1xf32, #tpu.memory_space<vmem>>, vector<32x1xf32>
    %c0_11 = arith.constant 0 : index
    %c0_12 = arith.constant 0 : index
    %16 = vector.load %arg7[%c0_11, %c0_12] : memref<1x1xf32, #tpu.memory_space<vmem>>, vector<1x1xf32>
    %17 = vector.broadcast %15 : vector<32x1xf32> to vector<32x512xf32>
    %18 = arith.mulf %14, %17 : vector<32x512xf32>
    %cst_13 = arith.constant dense<0.000000e+00> : vector<512xf32>
    %19 = vector.multi_reduction <add>, %18, %cst_13 [0] : vector<32x512xf32> to vector<512xf32>
    %20 = vector.shape_cast %19 : vector<512xf32> to vector<1x512xf32>
    %21 = vector.broadcast %16 : vector<1x1xf32> to vector<1x512xf32>
    %22 = arith.addf %20, %21 : vector<1x512xf32>
    %c0_14 = arith.constant 0 : index
    %c0_15 = arith.constant 0 : index
    %23 = vector.load %arg8[%c0_14, %c0_15] : memref<1x512xf32, #tpu.memory_space<vmem>>, vector<1x512xf32>
    tpu.vector_store %arg8[%c0_14, %c0_15], %22 {strides = array<i32>} : memref<1x512xf32, #tpu.memory_space<vmem>>, vector<1x512xf32>,
    return
  }
  func.func @transform_0(%arg0: i32) -> (i32, i32) {
    %c0_i32 = arith.constant 0 : i32
    %c0_i32_0 = arith.constant 0 : i32
    return %c0_i32, %arg0 : i32, i32
  }
  func.func @transform_1(%arg0: i32) -> (i32, i32) {
    %c0_i32 = arith.constant 0 : i32
    %c0_i32_0 = arith.constant 0 : i32
    %c0_i32_1 = arith.constant 0 : i32
    return %c0_i32, %c0_i32_0 : i32, i32
  }
  func.func @transform_2(%arg0: i32) -> (i32, i32) {
    %c0_i32 = arith.constant 0 : i32
    %c0_i32_0 = arith.constant 0 : i32
    %c0_i32_1 = arith.constant 0 : i32
    return %c0_i32, %c0_i32_0 : i32, i32
  }
  func.func @transform_3(%arg0: i32) -> (i32, i32) {
    %c0_i32 = arith.constant 0 : i32
    %c0_i32_0 = arith.constant 0 : i32
    %c0_i32_1 = arith.constant 0 : i32
    return %c0_i32, %c0_i32_0 : i32, i32
  }
  func.func @transform_4(%arg0: i32) -> (i32, i32) {
    %c0_i32 = arith.constant 0 : i32
    %c0_i32_0 = arith.constant 0 : i32
    %c0_i32_1 = arith.constant 0 : i32
    return %c0_i32, %c0_i32_0 : i32, i32
  }
  func.func @transform_5(%arg0: i32) -> (i32, i32) {
    %c0_i32 = arith.constant 0 : i32
    %c0_i32_0 = arith.constant 0 : i32
    %c0_i32_1 = arith.constant 0 : i32
    return %c0_i32, %c0_i32_0 : i32, i32
  }
  func.func @transform_6(%arg0: i32) -> (i32, i32) {
    %c0_i32 = arith.constant 0 : i32
    %c0_i32_0 = arith.constant 0 : i32
    %c0_i32_1 = arith.constant 0 : i32
    return %c0_i32, %c0_i32_0 : i32, i32
  }
  func.func @transform_7(%arg0: i32) -> (i32, i32) {
    %c0_i32 = arith.constant 0 : i32
    %c0_i32_0 = arith.constant 0 : i32
    return %c0_i32, %arg0 : i32, i32
  }
}

</mosaic_0001>

<bundles_post_ra>
// kernel: tpu_custom_call.1
= control target key start
LH: loop header
LB: loop body
LE: loop exit
PB: predicated region body
PF: predicated region fallthrough
CT: control target
= control target key end

     0   :  { %s2476_s0 = inlined_call_operand.vmem [shape: f32[1,512], index: 0, kind: input, shape index: {}]   ;;  %s2477_s1 = inlined_call_operand.vmem [shape: f32[32,1], index: 1, kind: input, shape index: {}]   ;;  %s2478_s2 = inlined_call_operand.vmem [shape: f32[32,1], index: 2, kind: input, shape index: {}]   ;;  %s2479_s3 = inlined_call_operand.vmem [shape: f32[32,32], index: 3, kind: input, shape index: {}]   ;;  %s2480_s4 = inlined_call_operand.vmem [shape: f32[32,1], index: 4, kind: input, shape index: {}]   ;;  %s2481_s5 = inlined_call_operand.vmem [shape: f32[32,1], index: 5, kind: input, shape index: {}]   ;;  %s2482_s6 = inlined_call_operand.<no memory space> [shape: f32[1,1], index: 6, kind: input, shape index: {}]   ;;  %s2483_s7 = inlined_call_operand.hbm [shape: f32[1,512], index: 7, kind: output, shape index: {}]  }
   0x1   :  { %v12_v0 = vstv %s2482_s6 }
   0x2   :  { %13 = vst [vmem:[#allocation2] sm:$0x1] %v12_v0 }
   0x3   :  { %v91_v1 = vld [vmem:[%s2478_s2] sm:$0xff]  ;;  %v2008_v3 = vmov 0   ;;  %v92_v4 = vld [vmem:[%s2478_s2 + $0x8] sm:$0xff] }
   0x4   :  { %v30_v2 = vld [vmem:[%s2477_s1] sm:$0xff]  ;;  %1919 = vset.pattern.permute.xlu1 %v2008_v3  ;;  %1918 = vset.pattern.permute.xlu0 %v2008_v3  ;;  %v31_v5 = vld [vmem:[%s2477_s1 + $0x8] sm:$0xff] }
   0x5   :  { %97 = vperm.xlu1 %1919, %v91_v1   ;;  %36 = vperm.xlu0 %1918, %v30_v2  }
   0x9   :  { %102 = vperm.xlu1 %1919, %v92_v4   ;;  %41 = vperm.xlu0 %1918, %v31_v5  }
   0xa   :  { %14 = vsyncpa [#allocation4], 0  ;;  %v33_v6 = vld [vmem:[%s2477_s1 + $0x18] sm:$0xff]  ;;  %v32_v7 = vld [vmem:[%s2477_s1 + $0x10] sm:$0xff]  ;;  %v2009_v19 = vmov 0.0   ;;  %v2484_v20 = vlaneseq  ;;  %vm175_vm0 = vcmask 261120  }
   0xb   :  { %v94_v8 = vld [vmem:[%s2478_s2 + $0x18] sm:$0xff]  ;;  %v93_v9 = vld [vmem:[%s2478_s2 + $0x10] sm:$0xff]  ;;  %v152_v10 = vld [vmem:[%s2480_s4 + $0x8] sm:$0xff]  ;;  %260 = vmatprep.mubr.f32.mxu0 %v2009_v19  ;;  %950 = vmatprep.mubr.f32.mxu1 %v2009_v19 }
   0xc   :  { %v151_v11 = vld [vmem:[%s2480_s4] sm:$0xff]  ;;  %v154_v12 = vld [vmem:[%s2480_s4 + $0x18] sm:$0xff]  ;;  %v153_v13 = vld [vmem:[%s2480_s4 + $0x10] sm:$0xff]  ;;  %v2106_v21 = vshrl.u32 %v2484_v20, 7 }
   0xd   :  { %51 = vperm.xlu1 %1919, %v33_v6   ;;  %46 = vperm.xlu0 %1918, %v32_v7   ;;  %v1585_v14 = vld [vmem:[%s2481_s5 + $0x8] sm:$0xff]  ;;  %v1584_v15 = vld [vmem:[%s2481_s5] sm:$0xff]  ;;  %v1587_v16 = vld [vmem:[%s2481_s5 + $0x18] sm:$0xff] }
   0xe   :  { %v1586_v17 = vld [vmem:[%s2481_s5 + $0x10] sm:$0xff]  ;;  %v1588_v18 = vld [vmem:[#allocation2] sm:$0x1]  ;;  %v2485_v23 = vsub.s32 0, %v2106_v21  ;;  %v148_v24 = vld [vmem:[%s2479_s3 + $0x8] sm:$0xff]  ;;  %v61_v25 = vsub.s32 1, %v2106_v21 }
   0xf   :  { %v147_v22 = vld [vmem:[%s2479_s3] sm:$0xff]  ;;  %v65_v26 = vsub.s32 2, %v2106_v21  ;;  %v69_v27 = vsub.s32 3, %v2106_v21  ;;  %v180_v30 = vsel %vm175_vm0, %v148_v24, 0  ;;  %v149_v40 = vld [vmem:[%s2479_s3 + $0x10] sm:$0xff]  ;;  %v150_v60 = vld [vmem:[%s2479_s3 + $0x18] sm:$0xff] }
  0x10   :  { %v177_v28 = vsel %vm175_vm0, %v147_v22, 0  ;;  %v29_v29 = vld [vmem:[%s2476_s0] sm:$0xf]  ;;  %v2129_v36 = vand.u32 4294901760, %v180_v30  ;;  %v183_v49 = vsel %vm175_vm0, %v149_v40, 0  ;;  %v186_v3 = vsel %vm175_vm0, %v150_v60, 0 }
  0x11   :  { %112 = vperm.xlu1 %1919, %v94_v8   ;;  %107 = vperm.xlu0 %1918, %v93_v9   ;;  %v2123_v31 = vand.u32 4294901760, %v177_v28  ;;  %v58_v32 = vrot.slane %v29_v29, %v2485_v23  ;;  %v62_v33 = vrot.slane %v29_v29, %v61_v25  ;;  %v66_v34 = vrot.slane %v29_v29, %v65_v26  ;;  %s2011_s3 = smov [#allocation3]  }
  0x12   :  { %v2127_v35 = vrot.slane %v29_v29, %v69_v27  ;;  %v2139_v45 = vsub.f32 %v180_v30, %v2129_v36  ;;  %v2149_v59 = vand.u32 4294901760, %v183_v49  ;;  %s1714_s15 = sshll.u32 %s2011_s3, 4  ;;  %s1715_s15 = int_to_ptr.vmem [resolvable:$true] %s1714_s15 }
  0x13   :  { %v2132_v39 = vsub.f32 %v177_v28, %v2123_v31  ;;  %s1984_s16 = scalar_lea.vmem %s1715_s15, 64  ;;  %p1989_p1 = scmp.lt.s32.totalorder %s1715_s15, %s1715_s15 }
  0x14   :  { %v2147_v58 = vand.u32 4294901760, %v2139_v45  ;;  %v2160_v6 = vsub.f32 %v183_v49, %v2149_v59  ;;  %p1985_p0 = scmp.ne.s32.totalorder %s1715_s15, %s1984_s16  ;;  %p1990_p2 = scmp.lt.s32.totalorder %s1984_s16, %s1984_s16 }
  0x15   :  { %162 = vperm.xlu1 %1919, %v152_v10   ;;  %157 = vperm.xlu0 %1918, %v151_v11   ;;  %v2143_v53 = vand.u32 4294901760, %v2132_v39 }
  0x16   :  { %v275_v5 = vsub.f32 %v2139_v45, %v2147_v58  ;;  %v2170_v29 = vand.u32 4294901760, %v2160_v6  ;;  %p1991_p3 = por %p1990_p2, %p1989_p1 }
  0x17   :  { %v264_v4 = vsub.f32 %v2132_v39, %v2143_v53 }
  0x18   :  { %v2167_v25 = vand.u32 4294901760, %v275_v5  ;;  %v286_v49 = vsub.f32 %v2160_v6, %v2170_v29  ;;  %p1992_p4 = pnand %p1991_p3, %p1985_p0 }
  0x19   :  { %172 = vperm.xlu1 %1919, %v154_v12   ;;  %167 = vperm.xlu0 %1918, %v153_v13   ;;  %v2163_v13 = vand.u32 4294901760, %v186_v3  ;;  %v2165_v24 = vand.u32 4294901760, %v264_v4 }
  0x1d   :  { %1596 = vperm.xlu1 %1919, %v1585_v14   ;;  %1591 = vperm.xlu0 %1918, %v1584_v15  }
  0x21   :  { %1606 = vperm.xlu1 %1919, %v1587_v16   ;;  %1601 = vperm.xlu0 %1918, %v1586_v17  }
  0x25   :  { %1663 = vperm.xlu0 %1918, %v1588_v18  }
  0x84   :  { %v98_v37 = vpop.permute.xlu1 %97  ;;  %v37_v38 = vpop.permute.xlu0 %36 }
  0x85   :  { %v75_v41 = vmul.f32 %v58_v32, %v37_v38  ;;  %v76_v42 = vmul.f32 %v62_v33, %v37_v38  ;;  %v77_v43 = vmul.f32 %v66_v34, %v37_v38  ;;  %v78_v44 = vmul.f32 %v2127_v35, %v37_v38 }
  0x87   :  { %v115_v46 = vadd.f32 %v98_v37, %v75_v41  ;;  %v116_v47 = vadd.f32 %v98_v37, %v76_v42  ;;  %v117_v48 = vadd.f32 %v98_v37, %v77_v43  ;;  %v118_v50 = vadd.f32 %v98_v37, %v78_v44 }
  0x88   :  { %v103_v51 = vpop.permute.xlu1 %102  ;;  %v42_v52 = vpop.permute.xlu0 %41  ;;  %v2174_v42 = vsub.f32 %v186_v3, %v2163_v13 }
  0x89   :  { %1920 = vtanh.f32 %v115_v46  ;;  %v79_v54 = vmul.f32 %v58_v32, %v42_v52  ;;  %v80_v55 = vmul.f32 %v62_v33, %v42_v52  ;;  %v81_v56 = vmul.f32 %v66_v34, %v42_v52 }
  0x8a   :  { %1922 = vtanh.f32 %v116_v47  ;;  %v82_v57 = vmul.f32 %v2127_v35, %v42_v52 }
  0x8b   :  { %1924 = vtanh.f32 %v117_v48  ;;  %v119_v61 = vadd.f32 %v103_v51, %v79_v54  ;;  %v120_v62 = vadd.f32 %v103_v51, %v80_v55  ;;  %v121_v63 = vadd.f32 %v103_v51, %v81_v56 }
  0x8c   :  { %1926 = vtanh.f32 %v118_v50  ;;  %v122_v0 = vadd.f32 %v103_v51, %v82_v57  ;;  %v52_v1 = vpop.permute.xlu1 %51  ;;  %v47_v2 = vpop.permute.xlu0 %46 }
  0x8d   :  { %1928 = vtanh.f32 %v119_v61  ;;  %v87_v7 = vmul.f32 %v58_v32, %v52_v1  ;;  %v88_v8 = vmul.f32 %v62_v33, %v52_v1  ;;  %v89_v9 = vmul.f32 %v66_v34, %v52_v1 }
  0x8e   :  { %1930 = vtanh.f32 %v120_v62  ;;  %v90_v10 = vmul.f32 %v2127_v35, %v52_v1  ;;  %v83_v14 = vmul.f32 %v58_v32, %v47_v2  ;;  %v84_v18 = vmul.f32 %v62_v33, %v47_v2 }
  0x8f   :  { %1932 = vtanh.f32 %v121_v63  ;;  %v85_v27 = vmul.f32 %v66_v34, %v47_v2  ;;  %v86_v37 = vmul.f32 %v2127_v35, %v47_v2 }
  0x90   :  { %1934 = vtanh.f32 %v122_v0  ;;  %v113_v11 = vpop.permute.xlu1 %112  ;;  %v108_v12 = vpop.permute.xlu0 %107 }
  0x91   :  { %v127_v15 = vadd.f32 %v113_v11, %v87_v7  ;;  %v128_v16 = vadd.f32 %v113_v11, %v88_v8  ;;  %v129_v17 = vadd.f32 %v113_v11, %v89_v9  ;;  %v130_v22 = vadd.f32 %v113_v11, %v90_v10 }
  0x92   :  { %v123_v28 = vadd.f32 %v108_v12, %v83_v14  ;;  %v124_v32 = vadd.f32 %v108_v12, %v84_v18  ;;  %v125_v33 = vadd.f32 %v108_v12, %v85_v27  ;;  %v126_v34 = vadd.f32 %v108_v12, %v86_v37 }
  0x93   :  { %v1921_v26 = vpop.eup %1920  ;;  %1936 = vtanh.f32 %v127_v15  ;;  %v2206_v9 = vand.u32 4294901760, %v2174_v42 }
  0x94   :  { %v1923_v30 = vpop.eup %1922  ;;  %1938 = vtanh.f32 %v128_v16  ;;  %v190_v38 = vand.u32 4294901760, %v1921_v26 }
  0x95   :  { %v1925_v40 = vpop.eup %1924  ;;  %1940 = vtanh.f32 %v129_v17  ;;  %v188_v41 = vand.u32 4294901760, %v1923_v30 }
  0x96   :  { %v1927_v43 = vpop.eup %1926  ;;  %1942 = vtanh.f32 %v130_v22  ;;  %v2176_v44 = vsub.f32 %v1921_v26, %v190_v38  ;;  %v880_v46 = vand.u32 4294901760, %v1925_v40 }
  0x97   :  { %v1929_v47 = vpop.eup %1928  ;;  %1944 = vtanh.f32 %v123_v28  ;;  %v2178_v48 = vsub.f32 %v1923_v30, %v188_v41  ;;  %v878_v35 = vand.u32 4294901760, %v1927_v43 }
  0x98   :  { %v1931_v50 = vpop.eup %1930  ;;  %1946 = vtanh.f32 %v124_v32  ;;  %v194_v51 = vand.u32 4294901760, %v1929_v47  ;;  %v2182_v52 = vsub.f32 %v1925_v40, %v880_v46  ;;  %v2487_v54 = vand.u32 4294901760, %v2176_v44 }
  0x99   :  { %v1933_v55 = vpop.eup %1932  ;;  %1948 = vtanh.f32 %v125_v33  ;;  %v192_v56 = vand.u32 4294901760, %v1931_v50  ;;  %v2185_v57 = vsub.f32 %v1927_v43, %v878_v35  ;;  %v307_v60 = vand.u32 4294901760, %v2178_v48 }
  0x9a   :  { %v1935_v61 = vpop.eup %1934  ;;  %1950 = vtanh.f32 %v126_v34  ;;  %v2188_v62 = vpack.c.bf16 %v194_v51, %v190_v38  ;;  %v2190_v63 = vsub.f32 %v1929_v47, %v194_v51  ;;  %v884_v0 = vand.u32 4294901760, %v1933_v55 }
  0x9b   :  { %v2192_v1 = vpack.c.bf16 %v192_v56, %v188_v41  ;;  %v2194_v2 = vsub.f32 %v1931_v50, %v192_v56  ;;  %v882_v3 = vand.u32 4294901760, %v1935_v61  ;;  %v308_v4 = vsub.f32 %v2178_v48, %v307_v60 }
  0x9c   :  { %v2199_v5 = vpack.c.bf16 %v884_v0, %v880_v46  ;;  %v2490_v7 = vand.u32 4294901760, %v2185_v57  ;;  %v314_v8 = vsub.f32 %v2176_v44, %v2487_v54  ;;  %v2213_v14 = vsub.f32 %v1933_v55, %v884_v0 }
  0x9d   :  { %v1937_v10 = vpop.eup %1936  ;;  %1723 = vmatprep.subr.bf16.mxu0 %v2192_v1  ;;  %v2209_v11 = vpack.c.bf16 %v882_v3, %v878_v35  ;;  %v2211_v12 = vsub.f32 %v1935_v61, %v882_v3  ;;  %v2491_v15 = vand.u32 4294901760, %v2194_v2  ;;  %v309_v18 = vand.u32 4294901760, %v308_v4 }
  0x9e   :  { %v1939_v16 = vpop.eup %1938  ;;  %1725 = vmatpush1.bf16.msra.mxu0 %v2188_v62  ;;  %v202_v17 = vand.u32 4294901760, %v1937_v10  ;;  %v998_v22 = vsub.f32 %v2185_v57, %v2490_v7  ;;  %v2486_v26 = vand.u32 4294901760, %v2190_v63  ;;  %v2489_v32 = vand.u32 4294901760, %v2182_v52 }
  0x9f   :  { %v1941_v27 = vpop.eup %1940  ;;  %1771 = vmatprep.subr.bf16.mxu1 %v2209_v11  ;;  %v200_v28 = vand.u32 4294901760, %v1939_v16  ;;  %v320_v30 = vsub.f32 %v2194_v2, %v2491_v15  ;;  %v2488_v37 = vand.u32 4294901760, %v2211_v12  ;;  %v315_v41 = vand.u32 4294901760, %v314_v8 }
  0xa0   :  { %v1943_v38 = vpop.eup %1942  ;;  %1773 = vmatpush1.bf16.msra.mxu1 %v2199_v5  ;;  %v2228_v40 = vsub.f32 %v1937_v10, %v202_v17  ;;  %v892_v33 = vand.u32 4294901760, %v1941_v27  ;;  %v326_v43 = vsub.f32 %v2190_v63, %v2486_v26  ;;  %v999_v35 = vand.u32 4294901760, %v998_v22 }
  0xa1   :  { %v1945_v34 = vpop.eup %1944  ;;  %v890_v46 = vand.u32 4294901760, %v1943_v38  ;;  %v321_v47 = vand.u32 4294901760, %v320_v30  ;;  %v1010_v50 = vsub.f32 %v2211_v12, %v2488_v37  ;;  %v2236_v55 = vsub.f32 %v1939_v16, %v200_v28 }
  0xa2   :  { %v1947_v51 = vpop.eup %1946  ;;  %v198_v56 = vand.u32 4294901760, %v1945_v34  ;;  %v327_v61 = vand.u32 4294901760, %v326_v43  ;;  %v1004_v0 = vsub.f32 %v2182_v52, %v2489_v32  ;;  %v2243_v10 = vsub.f32 %v1941_v27, %v892_v33 }
  0xa3   :  { %v1949_v3 = vpop.eup %1948  ;;  %v196_v4 = vand.u32 4294901760, %v1947_v51  ;;  %v2241_v8 = vsub.f32 %v1943_v38, %v890_v46  ;;  %v1011_v22 = vand.u32 4294901760, %v1010_v50  ;;  %v1730_v26 = vpack.c.bf16 %v321_v47, %v309_v18 }
  0xa4   :  { %v1951_v30 = vpop.eup %1950  ;;  %v2245_v20 = vpack.c.bf16 %v202_v17, %v198_v56  ;;  %v2247_v23 = vsub.f32 %v1945_v34, %v198_v56  ;;  %v888_v16 = vand.u32 4294901760, %v1949_v3  ;;  %v1732_v32 = vpack.c.bf16 %v327_v61, %v315_v41 }
  0xa5   :  { %v2249_v54 = vpack.c.bf16 %v200_v28, %v196_v4  ;;  %v2251_v43 = vsub.f32 %v1947_v51, %v196_v4  ;;  %v886_v37 = vand.u32 4294901760, %v1951_v30  ;;  %v1778_v27 = vpack.c.bf16 %v1011_v22, %v999_v35 }
  0xa6   :  { %v2253_v7 = vpack.c.bf16 %v892_v33, %v888_v16  ;;  %v2255_v38 = vsub.f32 %v1949_v3, %v888_v16  ;;  %v1005_v15 = vand.u32 4294901760, %v1004_v0  ;;  %v2496_v18 = vand.u32 4294901760, %v2213_v14 }
  0xa7   :  { %1727 = vmatprep.subr.bf16.mxu0 %v2249_v54  ;;  %v2258_v17 = vpack.c.bf16 %v890_v46, %v886_v37  ;;  %v2260_v34 = vsub.f32 %v1951_v30, %v886_v37  ;;  %v331_v28 = vand.u32 4294901760, %v2251_v43  ;;  %v343_v41 = vand.u32 4294901760, %v2236_v55 }
  0xa8   :  { %1729 = vmatpush1.bf16.msra.mxu0 %v2245_v20  ;;  %v2493_v33 = vand.u32 4294901760, %v2241_v8  ;;  %v2492_v47 = vand.u32 4294901760, %v2247_v23  ;;  %v2494_v35 = vand.u32 4294901760, %v2228_v40  ;;  %v1016_v37 = vsub.f32 %v2213_v14, %v2496_v18 }
  0xa9   :  { %1775 = vmatprep.subr.bf16.mxu1 %v2258_v17  ;;  %1731 = vmatprep.subr.bf16.mxu0 %v1730_v26  ;;  %v332_v46 = vsub.f32 %v2251_v43, %v331_v28  ;;  %v2495_v50 = vand.u32 4294901760, %v2260_v34  ;;  %v1027_v51 = vand.u32 4294901760, %v2255_v38  ;;  %v344_v56 = vsub.f32 %v2236_v55, %v343_v41 }
  0xaa   :  { %1777 = vmatpush1.bf16.msra.mxu1 %v2253_v7  ;;  %v1034_v26 = vsub.f32 %v2241_v8, %v2493_v33  ;;  %v338_v61 = vsub.f32 %v2247_v23, %v2492_v47  ;;  %v350_v0 = vsub.f32 %v2228_v40, %v2494_v35  ;;  %v1017_v3 = vand.u32 4294901760, %v1016_v37 }
  0xab   :  { %1779 = vmatprep.subr.bf16.mxu1 %v1778_v27  ;;  %266 = vmatmul.mubr.f32.vlgmr.msra.gmra.mrb[0].mxu0 %v2165_v24  ;;  %v333_v4 = vand.u32 4294901760, %v332_v46  ;;  %v1022_v22 = vsub.f32 %v2260_v34, %v2495_v50  ;;  %v1028_v30 = vsub.f32 %v2255_v38, %v1027_v51  ;;  %v345_v16 = vand.u32 4294901760, %v344_v56 }
  0xac   :  { %1733 = vmatpush1.bf16.msra.mxu0 %v1732_v32  ;;  %271 = vmatprep.mubr.f32.mxu0 %v2009_v19  ;;  %v1035_v47 = vand.u32 4294901760, %v1034_v26  ;;  %v339_v33 = vand.u32 4294901760, %v338_v61  ;;  %v351_v35 = vand.u32 4294901760, %v350_v0  ;;  %v1780_v27 = vpack.c.bf16 %v1017_v3, %v1005_v15 }
  0xad   :  { %956 = vmatmul.mubr.f32.vlgmr.msra.gmra.mrb[0].mxu1 %v2165_v24  ;;  %v1023_v37 = vand.u32 4294901760, %v1022_v22  ;;  %v1039_v46 = vand.u32 4294901760, %v2243_v10  ;;  %v1734_v50 = vpack.c.bf16 %v345_v16, %v333_v4  ;;  %v287_v32 = vand.u32 4294901760, %v286_v49 }
  0xae   :  { %961 = vmatprep.mubr.f32.mxu1 %v2009_v19  ;;  %v1736_v18 = vpack.c.bf16 %v351_v35, %v339_v33  ;;  %1781 = vmatpush1.bf16.msra.mxu1 %v1780_v27  ;;  %v1029_v26 = vand.u32 4294901760, %v1028_v30  ;;  %v297_v15 = vsub.f32 %v2174_v42, %v2206_v9  ;;  %v1738_v49 = vpack.c.bf16 %v2194_v2, %v2178_v48 }
  0xaf   :  { %277 = vmatmul.mubr.f32.gmra.mrb[2].mxu0 %v2167_v25  ;;  %v1782_v56 = vpack.c.bf16 %v1035_v47, %v1023_v37  ;;  %v1040_v24 = vsub.f32 %v2243_v10, %v1039_v46  ;;  %1735 = vmatprep.subr.bf16.mxu0 %v1734_v50  ;;  %v1786_v61 = vpack.c.bf16 %v2211_v12, %v2185_v57  ;;  %v2497_v22 = vand.u32 4294901760, %v2194_v2 }
  0xb0   :  { %282 = vmatprep.mubr.f32.mxu0 %v2009_v19  ;;  %1737 = vmatpush1.bf16.msra.mxu0 %v1736_v18  ;;  %v298_v35 = vand.u32 4294901760, %v297_v15  ;;  %v1742_v18 = vpack.c.bf16 %v2236_v55, %v2251_v43  ;;  %v1788_v50 = vpack.c.bf16 %v2213_v14, %v2182_v52  ;;  %v1790_v0 = vpack.c.bf16 %v2241_v8, %v2260_v34 }
  0xb1   :  { %967 = vmatmul.mubr.f32.gmra.mrb[2].mxu1 %v2167_v25  ;;  %1783 = vmatprep.subr.bf16.mxu1 %v1782_v56  ;;  %v1041_v33 = vand.u32 4294901760, %v1040_v24  ;;  %v1740_v25 = vpack.c.bf16 %v2190_v63, %v2176_v44  ;;  %v1744_v3 = vpack.c.bf16 %v2228_v40, %v2247_v23  ;;  %v1792_v4 = vpack.c.bf16 %v2243_v10, %v2255_v38 }
  0xb2   :  { %972 = vmatprep.mubr.f32.mxu1 %v2009_v19  ;;  %1739 = vmatprep.subr.bf16.mxu0 %v1738_v49  ;;  %v1754_v30 = vpack.c.bf16 %v2497_v22, %v307_v60  ;;  %v2499_v16 = vand.u32 4294901760, %v2211_v12  ;;  %v2501_v48 = vand.u32 4294901760, %v2190_v63  ;;  %v2502_v60 = vand.u32 4294901760, %v2182_v52 }
  0xb3   :  { %v1784_v47 = vpack.c.bf16 %v1041_v33, %v1029_v26  ;;  %288 = vmatmul.mubr.f32.gmra.mrb[4].mxu0 %v287_v32  ;;  %v2503_v2 = vand.u32 4294901760, %v2213_v14  ;;  %v2505_v63 = vand.u32 4294901760, %v2241_v8  ;;  %v2506_v55 = vand.u32 4294901760, %v2247_v23 }
  0xb4   :  { %293 = vmatprep.mubr.f32.mxu0 %v2009_v19  ;;  %v2507_v52 = vand.u32 4294901760, %v2228_v40 }
  0xb5   :  { %1785 = vmatpush1.bf16.msra.mxu1 %v1784_v47 }
  0xb6   :  { %1787 = vmatprep.subr.bf16.mxu1 %v1786_v61  ;;  %978 = vmatmul.mubr.f32.gmra.mrb[4].mxu1 %v287_v32  ;;  %v1760_v43 = vpack.c.bf16 %v2507_v52, %v2506_v55 }
  0xb7   :  { %983 = vmatprep.mubr.f32.mxu1 %v2009_v19  ;;  %299 = vmatmul.mubr.f32.gmra.mrb[6].mxu0 %v298_v35 }
  0xb8   :  { %409 = vmatprep.mubr.f32.mxu0 %v2009_v19 }
  0xba   :  { %989 = vmatmul.mubr.f32.gmra.mrb[6].mxu1 %v298_v35 }
  0xbb   :  { %1099 = vmatprep.mubr.f32.mxu1 %v2009_v19  ;;  %411 = vmatmul.mubr.f32.vlgmr.msra.gmra.mrb[0].mxu0 %v2123_v31 }
  0xbc   :  { %1741 = vmatpush1.bf16.msra.mxu0 %v1740_v25  ;;  %416 = vmatprep.mubr.f32.mxu0 %v2009_v19 }
  0xbd   :  { %1743 = vmatprep.subr.bf16.mxu0 %v1742_v18 }
  0xbe   :  { %1101 = vmatmul.mubr.f32.vlgmr.msra.gmra.mrb[0].mxu1 %v2123_v31 }
  0xbf   :  { %1789 = vmatpush1.bf16.msra.mxu1 %v1788_v50  ;;  %1106 = vmatprep.mubr.f32.mxu1 %v2009_v19 }
  0xc0   :  { %1791 = vmatprep.subr.bf16.mxu1 %v1790_v0  ;;  %418 = vmatmul.mubr.f32.gmra.mrb[2].mxu0 %v2129_v36 }
  0xc1   :  { %1745 = vmatpush1.bf16.msra.mxu0 %v1744_v3  ;;  %423 = vmatprep.mubr.f32.mxu0 %v2009_v19 }
  0xc2   :  { %1108 = vmatmul.mubr.f32.gmra.mrb[2].mxu1 %v2129_v36  ;;  %1747 = vmatprep.subr.bf16.mxu0 %v2192_v1 }
  0xc3   :  { %1793 = vmatpush1.bf16.msra.mxu1 %v1792_v4  ;;  %1113 = vmatprep.mubr.f32.mxu1 %v2009_v19 }
  0xc4   :  { %1795 = vmatprep.subr.bf16.mxu1 %v2209_v11  ;;  %425 = vmatmul.mubr.f32.gmra.mrb[4].mxu0 %v2149_v59 }
  0xc5   :  { %430 = vmatprep.mubr.f32.mxu0 %v2009_v19 }
  0xc6   :  { %1115 = vmatmul.mubr.f32.gmra.mrb[4].mxu1 %v2149_v59 }
  0xc7   :  { %1120 = vmatprep.mubr.f32.mxu1 %v2009_v19 }
  0xc8   :  { %432 = vmatmul.mubr.f32.gmra.mrb[6].mxu0 %v2163_v13 }
  0xc9   :  { %518 = vmatprep.mubr.f32.mxu0 %v2009_v19 }
  0xca   :  { %1122 = vmatmul.mubr.f32.gmra.mrb[6].mxu1 %v2163_v13 }
  0xcb   :  { %1208 = vmatprep.mubr.f32.mxu1 %v2009_v19 }
  0xcc   :  { %521 = vmatmul.mubr.f32.vlgmr.msra.gmra.mrb[0].mxu0 %v2132_v39 }
  0xcd   :  { %1749 = vmatpush1.bf16.msra.mxu0 %v2188_v62  ;;  %526 = vmatprep.mubr.f32.mxu0 %v2009_v19 }
  0xce   :  { %1211 = vmatmul.mubr.f32.vlgmr.msra.gmra.mrb[0].mxu1 %v2132_v39  ;;  %1751 = vmatprep.subr.bf16.mxu0 %v2249_v54  ;;  %v2498_v39 = vand.u32 4294901760, %v2185_v57 }
  0xcf   :  { %1797 = vmatpush1.bf16.msra.mxu1 %v2199_v5  ;;  %1216 = vmatprep.mubr.f32.mxu1 %v2009_v19 }
  0xd0   :  { %1799 = vmatprep.subr.bf16.mxu1 %v2258_v17  ;;  %529 = vmatmul.mubr.f32.gmra.mrb[2].mxu0 %v2139_v45  ;;  %v1802_v27 = vpack.c.bf16 %v2499_v16, %v2498_v39 }
  0xd1   :  { %1753 = vmatpush1.bf16.msra.mxu0 %v2245_v20  ;;  %534 = vmatprep.mubr.f32.mxu0 %v2009_v19 }
  0xd2   :  { %1219 = vmatmul.mubr.f32.gmra.mrb[2].mxu1 %v2139_v45  ;;  %1755 = vmatprep.subr.bf16.mxu0 %v1754_v30  ;;  %v2500_v45 = vand.u32 4294901760, %v2176_v44  ;;  %v2504_v44 = vand.u32 4294901760, %v2260_v34 }
  0xd3   :  { %1801 = vmatpush1.bf16.msra.mxu1 %v2253_v7  ;;  %1224 = vmatprep.mubr.f32.mxu1 %v2009_v19 }
  0xd4   :  { %1803 = vmatprep.subr.bf16.mxu1 %v1802_v27  ;;  %537 = vmatmul.mubr.f32.gmra.mrb[4].mxu0 %v2160_v6  ;;  %v1756_v57 = vpack.c.bf16 %v2501_v48, %v2500_v45  ;;  %v1806_v12 = vpack.c.bf16 %v2505_v63, %v2504_v44 }
  0xd5   :  { %542 = vmatprep.mubr.f32.mxu0 %v2009_v19 }
  0xd6   :  { %1227 = vmatmul.mubr.f32.gmra.mrb[4].mxu1 %v2160_v6  ;;  %v1758_v6 = vpack.c.bf16 %v343_v41, %v331_v28 }
  0xd7   :  { %1232 = vmatprep.mubr.f32.mxu1 %v2009_v19 }
  0xd8   :  { %545 = vmatmul.mubr.f32.gmra.mrb[6].mxu0 %v2174_v42 }
  0xd9   :  { %623 = vmatprep.mubr.f32.mxu0 %v2009_v19 }
  0xda   :  { %1235 = vmatmul.mubr.f32.gmra.mrb[6].mxu1 %v2174_v42  ;;  %v1804_v42 = vpack.c.bf16 %v2503_v2, %v2502_v60 }
  0xdb   :  { %1313 = vmatprep.mubr.f32.mxu1 %v2009_v19 }
  0xdc   :  { %627 = vmatmul.mubr.f32.vlgmr.msra.gmra.mrb[0].mxu0 %v2143_v53 }
  0xdd   :  { %1757 = vmatpush1.bf16.msra.mxu0 %v1756_v57  ;;  %632 = vmatprep.mubr.f32.mxu0 %v2009_v19 }
  0xde   :  { %1317 = vmatmul.mubr.f32.vlgmr.msra.gmra.mrb[0].mxu1 %v2143_v53  ;;  %1759 = vmatprep.subr.bf16.mxu0 %v1758_v6  ;;  %v1808_v53 = vpack.c.bf16 %v1039_v46, %v1027_v51 }
  0xdf   :  { %1805 = vmatpush1.bf16.msra.mxu1 %v1804_v42  ;;  %1322 = vmatprep.mubr.f32.mxu1 %v2009_v19 }
  0xe0   :  { %1807 = vmatprep.subr.bf16.mxu1 %v1806_v12  ;;  %636 = vmatmul.mubr.f32.gmra.mrb[2].mxu0 %v2147_v58 }
  0xe1   :  { %1761 = vmatpush1.bf16.msra.mxu0 %v1760_v43  ;;  %641 = vmatprep.mubr.f32.mxu0 %v2009_v19 }
  0xe2   :  { %1326 = vmatmul.mubr.f32.gmra.mrb[2].mxu1 %v2147_v58  ;;  %1763 = vmatprep.subr.bf16.mxu0 %v2192_v1  ;;  %v163_v1 = vpop.permute.xlu1 %162 }
  0xe3   :  { %1809 = vmatpush1.bf16.msra.mxu1 %v1808_v53  ;;  %1331 = vmatprep.mubr.f32.mxu1 %v2009_v19 }
  0xe4   :  { %1811 = vmatprep.subr.bf16.mxu1 %v2209_v11  ;;  %645 = vmatmul.mubr.f32.gmra.mrb[4].mxu0 %v2170_v29 }
  0xe5   :  { %650 = vmatprep.mubr.f32.mxu0 %v2009_v19 }
  0xe6   :  { %1335 = vmatmul.mubr.f32.gmra.mrb[4].mxu1 %v2170_v29  ;;  %v173_v41 = vpop.permute.xlu1 %172 }
  0xe7   :  { %1340 = vmatprep.mubr.f32.mxu1 %v2009_v19 }
  0xe8   :  { %654 = vmatmul.mubr.f32.gmra.mrb[6].mxu0 %v2206_v9 }
  0xe9   :  { %748 = vmatprep.mubr.f32.mxu0 %v2009_v19 }
  0xea   :  { %1344 = vmatmul.mubr.f32.gmra.mrb[6].mxu1 %v2206_v9  ;;  %v1597_v3 = vpop.permute.xlu1 %1596 }
  0xeb   :  { %1438 = vmatprep.mubr.f32.mxu1 %v2009_v19 }
  0xec   :  { %750 = vmatmul.mubr.f32.vlgmr.msra.gmra.mrb[0].mxu0 %v2123_v31 }
  0xed   :  { %1765 = vmatpush1.bf16.msra.mxu0 %v2188_v62  ;;  %755 = vmatprep.mubr.f32.mxu0 %v2009_v19 }
  0xee   :  { %1440 = vmatmul.mubr.f32.vlgmr.msra.gmra.mrb[0].mxu1 %v2123_v31  ;;  %1767 = vmatprep.subr.bf16.mxu0 %v2249_v54 }
  0xef   :  { %1813 = vmatpush1.bf16.msra.mxu1 %v2199_v5  ;;  %1445 = vmatprep.mubr.f32.mxu1 %v2009_v19 }
  0xf0   :  { %1815 = vmatprep.subr.bf16.mxu1 %v2258_v17  ;;  %757 = vmatmul.mubr.f32.gmra.mrb[2].mxu0 %v2129_v36 }
  0xf1   :  { %1769 = vmatpush1.bf16.msra.mxu0 %v2245_v20  ;;  %762 = vmatprep.mubr.f32.mxu0 %v2009_v19  ;;  %v158_v20 = vpop.permute.xlu0 %157 }
  0xf2   :  { %1447 = vmatmul.mubr.f32.gmra.mrb[2].mxu1 %v2129_v36 }
  0xf3   :  { %1817 = vmatpush1.bf16.msra.mxu1 %v2253_v7  ;;  %1452 = vmatprep.mubr.f32.mxu1 %v2009_v19 }
  0xf4   :  { %764 = vmatmul.mubr.f32.gmra.mrb[4].mxu0 %v2149_v59 }
  0xf5   :  { %769 = vmatprep.mubr.f32.mxu0 %v2009_v19  ;;  %v168_v40 = vpop.permute.xlu0 %167 }
  0xf6   :  { %1454 = vmatmul.mubr.f32.gmra.mrb[4].mxu1 %v2149_v59 }
  0xf7   :  { %1459 = vmatprep.mubr.f32.mxu1 %v2009_v19 }
  0xf8   :  { %771 = vmatmul.mubr.f32.gmra.mrb[6].mxu0 %v2163_v13 }
  0xf9   :  { %849 = vmatprep.mubr.f32.mxu0 %v2009_v19  ;;  %v1592_v35 = vpop.permute.xlu0 %1591 }
  0xfa   :  { %1461 = vmatmul.mubr.f32.gmra.mrb[6].mxu1 %v2163_v13 }
  0xfb   :  { %1539 = vmatprep.mubr.f32.mxu1 %v2009_v19 }
  0xfc   :  { %851 = vmatmul.mubr.f32.vlgmr.msra.gmra.mrb[0].mxu0 %v2123_v31 }
  0xfd   :  { %856 = vmatprep.mubr.f32.mxu0 %v2009_v19  ;;  %v1602_v2 = vpop.permute.xlu0 %1601 }
  0xfe   :  { %1541 = vmatmul.mubr.f32.vlgmr.msra.gmra.mrb[0].mxu1 %v2123_v31 }
  0xff   :  { %1546 = vmatprep.mubr.f32.mxu1 %v2009_v19 }
 0x100   :  { %858 = vmatmul.mubr.f32.gmra.mrb[2].mxu0 %v2129_v36 }
 0x101   :  { %863 = vmatprep.mubr.f32.mxu0 %v2009_v19 }
 0x102   :  { %1548 = vmatmul.mubr.f32.gmra.mrb[2].mxu1 %v2129_v36 }
 0x103   :  { %1553 = vmatprep.mubr.f32.mxu1 %v2009_v19 }
 0x104   :  { %865 = vmatmul.mubr.f32.gmra.mrb[4].mxu0 %v2149_v59 }
 0x105   :  { %870 = vmatprep.mubr.f32.mxu0 %v2009_v19 }
 0x106   :  { %1555 = vmatmul.mubr.f32.gmra.mrb[4].mxu1 %v2149_v59 }
 0x107   :  { %1560 = vmatprep.mubr.f32.mxu1 %v2009_v19 }
 0x108   :  { %872 = vmatmul.mubr.f32.gmra.mrb[6].mxu0 %v2163_v13 }
 0x10a   :  { %1562 = vmatmul.mubr.f32.gmra.mrb[6].mxu1 %v2163_v13 }
 0x1cf   :  { %v852_v23 = vpop.f32.mrb[0].mxu0 }
 0x1d0   :  { %v1818_v31 = vadd.f32 %v852_v23, %v158_v20  ;;  %v854_v58 = vpop.f32.mrb[1].mxu0 }
 0x1d1   :  { %v1542_v29 = vpop.f32.mrb[0].mxu1  ;;  %v1819_v36 = vadd.f32 %v854_v58, %v158_v20 }
 0x1d2   :  { %1952 = vtanh.f32 %v1818_v31  ;;  %v1826_v54 = vadd.f32 %v1542_v29, %v158_v20  ;;  %v1544_v62 = vpop.f32.mrb[1].mxu1 }
 0x1d3   :  { %1954 = vtanh.f32 %v1819_v36  ;;  %v1827_v5 = vadd.f32 %v1544_v62, %v158_v20  ;;  %v859_v7 = vpop.f32.mrb[2].mxu0  ;;  %v1607_v36 = vpop.permute.xlu1 %1606 }
 0x1d4   :  { %1956 = vtanh.f32 %v1826_v54  ;;  %v1820_v59 = vadd.f32 %v859_v7, %v163_v1  ;;  %v861_v19 = vpop.f32.mrb[3].mxu0 }
 0x1d5   :  { %1958 = vtanh.f32 %v1827_v5  ;;  %v1549_v9 = vpop.f32.mrb[2].mxu1  ;;  %v1821_v11 = vadd.f32 %v861_v19, %v163_v1 }
 0x1d6   :  { %1960 = vtanh.f32 %v1820_v59  ;;  %v1828_v13 = vadd.f32 %v1549_v9, %v163_v1  ;;  %v1551_v14 = vpop.f32.mrb[3].mxu1 }
 0x1d7   :  { %1962 = vtanh.f32 %v1821_v11  ;;  %v1829_v8 = vadd.f32 %v1551_v14, %v163_v1  ;;  %v866_v10 = vpop.f32.mrb[4].mxu0 }
 0x1d8   :  { %1964 = vtanh.f32 %v1828_v13  ;;  %v1822_v38 = vadd.f32 %v866_v10, %v168_v40  ;;  %v868_v17 = vpop.f32.mrb[5].mxu0 }
 0x1d9   :  { %1966 = vtanh.f32 %v1829_v8  ;;  %v1556_v34 = vpop.f32.mrb[4].mxu1  ;;  %v1823_v28 = vadd.f32 %v868_v17, %v168_v40 }
 0x1da   :  { %1968 = vtanh.f32 %v1822_v38  ;;  %v1830_v51 = vadd.f32 %v1556_v34, %v168_v40  ;;  %v1558_v37 = vpop.f32.mrb[5].mxu1 }
 0x1db   :  { %1970 = vtanh.f32 %v1823_v28  ;;  %v1831_v46 = vadd.f32 %v1558_v37, %v168_v40  ;;  %v873_v32 = vpop.f32.mrb[6].mxu0 }
 0x1dc   :  { %v1953_v56 = vpop.eup %1952  ;;  %1972 = vtanh.f32 %v1830_v51  ;;  %v1824_v26 = vadd.f32 %v873_v32, %v173_v41  ;;  %v875_v24 = vpop.f32.mrb[7].mxu0 }
 0x1dd   :  { %v1955_v15 = vpop.eup %1954  ;;  %1974 = vtanh.f32 %v1831_v46  ;;  %v1563_v33 = vpop.f32.mrb[6].mxu1  ;;  %v1825_v49 = vadd.f32 %v875_v24, %v173_v41  ;;  %v1609_v22 = vmul.f32 %v1953_v56, %v1592_v35  ;;  %v2010_v24 = vmov 1966171168  }
 0x1de   :  { %v1957_v47 = vpop.eup %1956  ;;  %1976 = vtanh.f32 %v1824_v26  ;;  %v1832_v61 = vadd.f32 %v1563_v33, %v173_v41  ;;  %v1565_v25 = vpop.f32.mrb[7].mxu1  ;;  %v1610_v16 = vmul.f32 %v1955_v15, %v1592_v35  ;;  %v1681_v15 = vunpack.c.l.s4 %v2010_v24 }
 0x1df   :  { %v1959_v18 = vpop.eup %1958  ;;  %1978 = vtanh.f32 %v1825_v49  ;;  %v1833_v50 = vadd.f32 %v1565_v25, %v173_v41  ;;  %v1611_v48 = vmul.f32 %v1957_v47, %v1592_v35  ;;  %v1664_v47 = vpop.permute.xlu0 %1663 }
 0x1e0   :  { %v1961_v0 = vpop.eup %1960  ;;  %1980 = vtanh.f32 %v1832_v61  ;;  %v1612_v42 = vmul.f32 %v1959_v18, %v1592_v35 }
 0x1e1   :  { %v1963_v4 = vpop.eup %1962  ;;  %v1613_v30 = vmul.f32 %v1961_v0, %v1597_v3  ;;  %1982 = vtanh.f32 %v1833_v50 }
 0x1e2   :  { %v1965_v39 = vpop.eup %1964  ;;  %v1614_v27 = vmul.f32 %v1963_v4, %v1597_v3  ;;  %v2508_v4 = vsub.s32 0, %v2106_v21 }
 0x1e3   :  { %v1967_v45 = vpop.eup %1966  ;;  %v1625_v57 = vadd.f32 %v1613_v30, %v1609_v22  ;;  %v1615_v6 = vmul.f32 %v1965_v39, %v1597_v3 }
 0x1e4   :  { %v1969_v60 = vpop.eup %1968  ;;  %v1634_v44 = vadd.f32 %v1614_v27, %v1610_v16  ;;  %v1616_v63 = vmul.f32 %v1967_v45, %v1597_v3  ;;  %v1682_v3 = vunpack.c.0.s8 %v1681_v15  ;;  %v1669_v22 = vrot.slane %v1664_v47, %v2508_v4 }
 0x1e5   :  { %v1971_v12 = vpop.eup %1970  ;;  %v1643_v55 = vadd.f32 %v1615_v6, %v1611_v48  ;;  %v1617_v52 = vmul.f32 %v1969_v60, %v1602_v2 }
 0x1e6   :  { %v1973_v43 = vpop.eup %1972  ;;  %v1652_v53 = vadd.f32 %v1616_v63, %v1612_v42  ;;  %v1618_v20 = vmul.f32 %v1971_v12, %v1602_v2  ;;  %v1685_v60 = vsub.s32 %v1682_v3, %v2106_v21 }
 0x1e7   :  { %v1975_v23 = vpop.eup %1974  ;;  %v1626_v31 = vadd.f32 %v1625_v57, %v1617_v52  ;;  %v1619_v58 = vmul.f32 %v1973_v43, %v1602_v2  ;;  %v2509_v43 = vlaneseq }
 0x1e8   :  { %v1977_v29 = vpop.eup %1976  ;;  %v1635_v54 = vadd.f32 %v1634_v44, %v1618_v20  ;;  %v1620_v62 = vmul.f32 %v1975_v23, %v1602_v2 }
 0x1e9   :  { %v1979_v1 = vpop.eup %1978  ;;  %v1644_v5 = vadd.f32 %v1643_v55, %v1619_v58  ;;  %v1621_v7 = vmul.f32 %v1977_v29, %v1607_v36  ;;  %vm1705_vm1 = vcmp.lt.s32.totalorder %v2509_v43, 512 }
 0x1ea   :  { %v1981_v59 = vpop.eup %1980  ;;  %v1653_v19 = vadd.f32 %v1652_v53, %v1620_v62  ;;  %v1622_v9 = vmul.f32 %v1979_v1, %v1607_v36 }
 0x1eb   :  { %v1983_v11 = vpop.eup %1982  ;;  %v1627_v13 = vadd.f32 %v1626_v31, %v1621_v7  ;;  %v1623_v14 = vmul.f32 %v1981_v59, %v1607_v36 }
 0x1ec   :  { %v1636_v40 = vadd.f32 %v1635_v54, %v1622_v9  ;;  %v1624_v8 = vmul.f32 %v1983_v11, %v1607_v36 }
 0x1ed   :  { %v1628_v10 = vrot.slane %v1627_v13, 4  ;;  %v1645_v38 = vadd.f32 %v1644_v5, %v1623_v14 }
 0x1ee   :  { %v1637_v17 = vrot.slane %v1636_v40, 4  ;;  %v1654_v34 = vadd.f32 %v1653_v19, %v1624_v8 }
 0x1ef   :  { %v1629_v28 = vadd.f32 %v1628_v10, %v1627_v13  ;;  %v1646_v41 = vrot.slane %v1645_v38, 4 }
 0x1f0   :  { %v1638_v51 = vadd.f32 %v1637_v17, %v1636_v40  ;;  %v1655_v37 = vrot.slane %v1654_v34, 4 }
 0x1f1   :  { %v1647_v46 = vadd.f32 %v1646_v41, %v1645_v38  ;;  %v1630_v32 = vrot.slane %v1629_v28, 2 }
 0x1f2   :  { %v1656_v56 = vadd.f32 %v1655_v37, %v1654_v34  ;;  %v1639_v26 = vrot.slane %v1638_v51, 2 }
 0x1f3   :  { %v1631_v33 = vadd.f32 %v1630_v32, %v1629_v28  ;;  %v1648_v49 = vrot.slane %v1647_v46, 2 }
 0x1f4   :  { %v1640_v35 = vadd.f32 %v1639_v26, %v1638_v51  ;;  %v1657_v61 = vrot.slane %v1656_v56, 2 }
 0x1f5   :  { %v1632_v25 = vrot.slane %v1631_v33, 1  ;;  %v1649_v18 = vadd.f32 %v1648_v49, %v1647_v46 }
 0x1f6   :  { %v1641_v50 = vrot.slane %v1640_v35, 1  ;;  %v1658_v0 = vadd.f32 %v1657_v61, %v1656_v56 }
 0x1f7   :  { %v1633_v30 = vadd.f32 %v1632_v25, %v1631_v33  ;;  %v1650_v39 = vrot.slane %v1649_v18, 1 }
 0x1f8   :  { %v1642_v16 = vadd.f32 %v1641_v50, %v1640_v35  ;;  %v1659_v27 = vrot.slane %v1658_v0, 1 }
 0x1f9   :  { %v1651_v45 = vadd.f32 %v1650_v39, %v1649_v18  ;;  %v1670_v48 = vadd.f32 %v1669_v22, %v1633_v30 }
 0x1fa   :  { %v1660_v57 = vadd.f32 %v1659_v27, %v1658_v0  ;;  %v1671_v6 = vadd.f32 %v1669_v22, %v1642_v16 }
 0x1fb   :  { %v1672_v2 = vadd.f32 %v1669_v22, %v1651_v45 }
 0x1fc   :  { %v1673_v42 = vadd.f32 %v1669_v22, %v1660_v57  ;;  %v1678_v44 = vcombine.low %v1670_v48, %v1671_v6 }
 0x1fe   :  { %v1679_v63 = vcombine.low %v1672_v2, %v1673_v42  ;;  %v1686_v12 = vrot.slane %v1678_v44, %v1685_v60 }
 0x200   :  { %v1693_v55 = vrot.slane %v1679_v63, %v1685_v60 }
 0x202   :  { %v1694_v52 = vcombine.low %v1686_v12, %v1693_v55 }
 0x204   :  { %v1701_v53 = vrot.slane %v1694_v52, %v1685_v60 }
 0x206   :  { %1707 = vst.msk [vmem:[#allocation3] sm:$0xf] %vm1705_vm1, %v1701_v53 }
 0x207   :  { %1995 = shalt.err (!%p1992_p4)
}
 0x208   :  { %s1996_s19 = scalar_lea.hbm %s2483_s7, 64 }
 0x209   :  { %p1997_p5 = scmp.ne.s32.totalorder %s2483_s7, %s1996_s19  ;;  %p2000_p6 = scmp.lt.u32.totalorder %s1996_s19, %s2483_s7 }
 0x20b   :  { %p2002_p7 = pnand %p2000_p6, %p1997_p5 }
 0x20d   :  { %2005 = shalt.err (!%p2002_p7)
}
 0x20e   :  { %1717 = dma.vmem_to_hbm [thread:$0]  %s1715_s15, 64, %s2483_s7, [#allocation4]  }
 0x20f   :  { %2006 = dma.done.wait [#allocation4], 64  }
 0x210   :  { %2007 = vsyncadd [#allocation4], 4294967232 }
 0x211   :  { %1721 = vsyncpa [#allocation4], 1 }

</bundles_post_ra>
